<compile_context>
chip_gen: v7x
topology: tpu7x:2x2x1
jax: 0.10.0
libtpu: 0.0.40
codegen_flags: <defaults>
</compile_context>

<pallas_src>
import functools
from typing import NamedTuple

import jax
import jax.numpy as jnp
from jax.experimental import pallas as pl
from jax.experimental.pallas import tpu as pltpu


def _round_up(n: int, m: int) -> int:
    return ((n + m - 1) // m) * m


def _tpu_defaults():
    """Chip-dependent knobs: (relu_in_bf16, vmem_cap_bytes, default_block_b)."""
    try:
        kind = jax.devices()[0].device_kind.lower()
    except Exception:
        kind = ""
    relu_bf16 = ("v6" in kind) or ("v7" in kind)      # bf16 VALU only on v6e/v7x
    if "v7" in kind:
        vmem_cap = 56 * 1024 * 1024                   # 64 MiB physical per TC
        block_b = 256
    elif "v6" in kind:
        vmem_cap = 100 * 1024 * 1024                  # 128 MiB physical
        block_b = 512
    elif "v5" in kind:
        vmem_cap = 100 * 1024 * 1024                  # 128 MiB physical
        block_b = 256
    else:
        vmem_cap = 48 * 1024 * 1024                   # safe on every generation
        block_b = 256
    return relu_bf16, vmem_cap, block_b


class FFNConfig(NamedTuple):
    d: int          # original embedding dim
    dp: int         # padded embedding dim (== d unless K-tiled)
    h: int          # hidden dim (1024)
    out: int        # original output dim
    out_p: int      # lane-padded output dim (multiple of 128)
    k_tile: int     # 0 => fused resident-weight kernel, else reduction tile over D
    relu_bf16: bool
    vmem_cap: int
    block_b: int


# ----------------------------- kernels ------------------------------------


def ffn_kernel_fused(x_ref, w1_ref, b1_ref, w2_ref, b2_ref, o_ref, *, relu_bf16):
    # x_ref:(bb,D) bf16 | w1_ref:(D,H) bf16 | b1_ref:(1,H) f32
    # w2_ref:(H,Op) bf16 | b2_ref:(1,Op) f32 | o_ref:(bb,Op) out dtype
    h = jnp.dot(x_ref[...], w1_ref[...], preferred_element_type=jnp.float32)
    h = h + b1_ref[...]
    if relu_bf16:
        h = jnp.maximum(h.astype(jnp.bfloat16), 0)        # bf16 VALU (v6e/v7x)
    else:
        h = jnp.maximum(h, 0.0).astype(jnp.bfloat16)       # f32 VALU (v5e)
    y = jnp.dot(h, w2_ref[...], preferred_element_type=jnp.float32)
    o_ref[...] = (y + b2_ref[...]).astype(o_ref.dtype)


def ffn_kernel_ktiled(x_ref, w1_ref, b1_ref, w2_ref, b2_ref, o_ref, acc_ref,
                      *, relu_bf16):
    # grid = (nb, nk); x_ref:(bb,tk) bf16 | w1_ref:(tk,H) bf16 streamed over k
    # acc_ref:(bb,H) f32 scratch accumulator
    k = pl.program_id(1)

    @pl.when(k == 0)
    def _():
        acc_ref[...] = jnp.zeros_like(acc_ref)

    acc_ref[...] += jnp.dot(x_ref[...], w1_ref[...],
                            preferred_element_type=jnp.float32)

    @pl.when(k == pl.num_programs(1) - 1)
    def _():
        h = acc_ref[...] + b1_ref[...]
        if relu_bf16:
            h = jnp.maximum(h.astype(jnp.bfloat16), 0)
        else:
            h = jnp.maximum(h, 0.0).astype(jnp.bfloat16)
        y = jnp.dot(h, w2_ref[...], preferred_element_type=jnp.float32)
        o_ref[...] = (y + b2_ref[...]).astype(o_ref.dtype)


# ----------------------------- wrapper -------------------------------------


def prepare_params(w1_t, b1, w2_t, b2, *, block_b=None, k_tile=None,
                   force_k_tiling=False):
    """One-time weight preparation (cast to bf16, lane-pad fc2). Do NOT call
    per forward pass; reuse the returned (params, cfg)."""
    relu_bf16, vmem_cap, default_bb = _tpu_defaults()
    if block_b is None:
        block_b = default_bb

    D, H = w1_t.shape
    O = w2_t.shape[1]
    Op = _round_up(O, 128)

    # Resident-weight footprint estimate (worst-case batch tile, f32 output).
    fused_bytes = (D * H * 2 + H * Op * 2 + 8 * H * 4 + 8 * Op * 4
                   + 2 * block_b * D * 2 + 2 * block_b * Op * 4)
    use_ktiled = force_k_tiling or fused_bytes > int(0.85 * vmem_cap)

    if use_ktiled:
        tk = k_tile if k_tile is not None else 512
        Dp = _round_up(D, tk)
    else:
        tk = 0
        Dp = D

    w1_b = w1_t.astype(jnp.bfloat16)
    if Dp != D:
        w1_b = jnp.pad(w1_b, ((0, Dp - D), (0, 0)))
    b1_f = b1.reshape(1, H).astype(jnp.float32)
    w2_b = w2_t.astype(jnp.bfloat16)
    b2_f = b2.reshape(1, O).astype(jnp.float32)
    if Op != O:
        w2_b = jnp.pad(w2_b, ((0, 0), (0, Op - O)))
        b2_f = jnp.pad(b2_f, ((0, 0), (0, Op - O)))

    cfg = FFNConfig(d=D, dp=Dp, h=H, out=O, out_p=Op, k_tile=tk,
                    relu_bf16=relu_bf16, vmem_cap=vmem_cap, block_b=block_b)
    return (w1_b, b1_f, w2_b, b2_f), cfg


@functools.partial(jax.jit, static_argnames=("cfg",))
def b1e_pred_model_ffn(x, w1_b, b1_f, w2_b, b2_f, cfg):
    """x: (B, D). Returns (B, output_dim) = fc2(relu(fc1(x))) in x.dtype."""
    B, D = x.shape
    H, Op, Dp = cfg.h, cfg.out_p, cfg.dp
    out_dtype = x.dtype
    out_itemsize = jnp.dtype(out_dtype).itemsize

    # Batch tile: multiple of 16 (bf16 sublane pack); split into >= 2 grid
    # steps when possible so the parallel axis shards across TensorCores.
    B16 = _round_up(B, 16)
    bb = min(cfg.block_b, B16)
    if bb >= B16 and B16 >= 32:
        bb = _round_up((B16 + 1) // 2, 16)
    Bp = _round_up(B, bb)
    nb = Bp // bb

    x_b = x.astype(jnp.bfloat16)
    if Bp != B or Dp != D:
        x_b = jnp.pad(x_b, ((0, Bp - B), (0, Dp - D)))

    resident = pl.Buffered(1)  # constant index_map -> single-buffer the weights

    if cfg.k_tile == 0:
        # Fused path: W1 fully resident in VMEM.
        kernel = functools.partial(ffn_kernel_fused, relu_bf16=cfg.relu_bf16)
        grid = (nb,)
        in_specs = [
            pl.BlockSpec((bb, Dp), lambda i: (i, 0)),                          # x tile
            pl.BlockSpec((Dp, H), lambda i: (0, 0), pipeline_mode=resident),   # W1^T
            pl.BlockSpec((1, H), lambda i: (0, 0), pipeline_mode=resident),    # b1
            pl.BlockSpec((H, Op), lambda i: (0, 0), pipeline_mode=resident),   # W2^T
            pl.BlockSpec((1, Op), lambda i: (0, 0), pipeline_mode=resident),   # b2
        ]
        out_specs = pl.BlockSpec((bb, Op), lambda i: (i, 0))
        scratch = []
        dims = ("parallel",)
        vmem_needed = (Dp * H * 2 + H * Op * 2 + 8 * H * 4 + 8 * Op * 4
                       + 2 * bb * Dp * 2 + 2 * bb * Op * out_itemsize)
    else:
        # K-tiled path: stream W1 over the embedding dim, f32 accumulator.
        tk = cfg.k_tile
        nk = Dp // tk
        kernel = functools.partial(ffn_kernel_ktiled, relu_bf16=cfg.relu_bf16)
        grid = (nb, nk)
        in_specs = [
            pl.BlockSpec((bb, tk), lambda i, k: (i, k)),                        # x tile
            pl.BlockSpec((tk, H), lambda i, k: (k, 0)),                         # W1 block
            pl.BlockSpec((1, H), lambda i, k: (0, 0), pipeline_mode=resident),  # b1
            pl.BlockSpec((H, Op), lambda i, k: (0, 0), pipeline_mode=resident), # W2^T
            pl.BlockSpec((1, Op), lambda i, k: (0, 0), pipeline_mode=resident), # b2
        ]
        out_specs = pl.BlockSpec((bb, Op), lambda i, k: (i, 0))
        scratch = [pltpu.VMEM((bb, H), jnp.float32)]
        dims = ("parallel", "arbitrary")
        vmem_needed = (2 * tk * H * 2 + H * Op * 2 + 8 * H * 4 + 8 * Op * 4
                       + 2 * bb * tk * 2 + 2 * bb * Op * out_itemsize
                       + bb * H * 4)

    vmem_limit = min(cfg.vmem_cap,
                     max(32 * 1024 * 1024,
                         int(vmem_needed * 1.25) + (2 << 20)))

    flops = 2 * Bp * Dp * H + 2 * Bp * H * Op
    bytes_accessed = (Bp * Dp * 2 + Dp * H * 2 + H * Op * 2
                      + (H + Op) * 4 + Bp * Op * out_itemsize)

    out = pl.pallas_call(
        kernel,
        out_shape=jax.ShapeDtypeStruct((Bp, Op), out_dtype),
        grid_spec=pltpu.PrefetchScalarGridSpec(
            num_scalar_prefetch=0,
            grid=grid,
            in_specs=in_specs,
            out_specs=out_specs,
            scratch_shapes=scratch,
        ),
        compiler_params=pltpu.CompilerParams(
            dimension_semantics=dims,
            vmem_limit_bytes=vmem_limit,
        ),
        cost_estimate=pl.CostEstimate(flops=flops, transcendentals=0,
                                      bytes_accessed=bytes_accessed),
    )(x_b, w1_b, b1_f, w2_b, b2_f)

    if Bp != B or Op != cfg.out:
        out = out[:B, :cfg.out]
    return out


# ----------------------------- reference -----------------------------------


def init_params(key, embedding_dim, hidden_dim, output_dim):
    """Deterministic init mimicking nn.Linear's uniform(-1/sqrt(fan_in), ...)."""
    k1, k2, k3, k4 = jax.random.split(key, 4)
    bound1 = 1.0 / jnp.sqrt(embedding_dim)
    bound2 = 1.0 / jnp.sqrt(hidden_dim)
    # PyTorch stores W as (out, in); we keep the transposed (in, out) layout.
    w1_t = jax.random.uniform(k1, (embedding_dim, hidden_dim), jnp.float32,
                              minval=-bound1, maxval=bound1)
    b1 = jax.random.uniform(k2, (1, hidden_dim), jnp.float32,
                            minval=-bound1, maxval=bound1)
    w2_t = jax.random.uniform(k3, (hidden_dim, output_dim), jnp.float32,
                              minval=-bound2, maxval=bound2)
    b2 = jax.random.uniform(k4, (1, output_dim), jnp.float32,
                            minval=-bound2, maxval=bound2)
    return w1_t, b1, w2_t, b2


def reference_ffn_f32(x, w1_t, b1, w2_t, b2):
    h = jnp.maximum(x @ w1_t + b1, 0.0)
    return h @ w2_t + b2


def reference_ffn_mixed(x, w1_t, b1, w2_t, b2):
    # Mirrors the kernel's mixed precision: bf16 matmul inputs, f32 accumulate.
    h = jnp.dot(x.astype(jnp.bfloat16), w1_t.astype(jnp.bfloat16),
                preferred_element_type=jnp.float32)
    h = jnp.maximum(h + b1, 0.0)
    y = jnp.dot(h.astype(jnp.bfloat16), w2_t.astype(jnp.bfloat16),
                preferred_element_type=jnp.float32)
    return y + b2


if __name__ == "__main__":
    # Small shapes consistent with the module (hidden=1024 is fixed by fc1).
    B, D, H, O = 8, 256, 1024, 16

    key = jax.random.PRNGKey(0)
    kx, kp = jax.random.split(key)
    x = jax.random.normal(kx, (B, D), jnp.float32)
    w1_t, b1, w2_t, b2 = init_params(kp, D, H, O)

    ref_mixed = reference_ffn_mixed(x, w1_t, b1, w2_t, b2)
    ref_f32 = reference_ffn_f32(x, w1_t, b1, w2_t, b2)

    # --- fused (resident-weight) path -------------------------------------
    params, cfg = prepare_params(w1_t, b1, w2_t, b2)
    out = jax.block_until_ready(b1e_pred_model_ffn(x, *params, cfg=cfg))
    assert out.shape == (B, O), out.shape
    assert jnp.allclose(out, ref_mixed, atol=2e-3, rtol=2e-3), \
        "fused path mismatch vs mixed-precision reference"
    assert jnp.allclose(out, ref_f32, atol=5e-2, rtol=5e-2), \
        "fused path mismatch vs f32 reference"

    # --- K-tiled path (forced at small D so it is exercised here) ---------
    params_k, cfg_k = prepare_params(w1_t, b1, w2_t, b2,
                                     force_k_tiling=True, k_tile=128)
    out_k = jax.block_until_ready(b1e_pred_model_ffn(x, *params_k, cfg=cfg_k))
    assert out_k.shape == (B, O), out_k.shape
    assert jnp.allclose(out_k, ref_mixed, atol=2e-3, rtol=2e-3), \
        "K-tiled path mismatch vs mixed-precision reference"

    print("KERNEL_OK")
</pallas_src>

<mosaic_0001>
module attributes {stable_mosaic.version = 11 : i64} {
  func.func @ffn_kernel_fused(%arg0: i32, %arg1: memref<16x256xbf16, #tpu.memory_space<vmem>>, %arg2: memref<256x1024xbf16, #tpu.memory_space<vmem>>, %arg3: memref<1x1024xf32, #tpu.memory_space<vmem>>, %arg4: memref<1024x128xbf16, #tpu.memory_space<vmem>>, %arg5: memref<1x128xf32, #tpu.memory_space<vmem>>, %arg6: memref<16x128xf32, #tpu.memory_space<vmem>>) attributes {dimension_semantics = [#tpu.dimension_semantics<parallel>], iteration_bounds = array<i64: 1>, scalar_prefetch = 0 : i64, scratch_operands = 0 : i64, tpu.core_type = #tpu.core_type<tc>, window_params = [{transform_indices = @transform_0, window_bounds = array<i64: 16, 256>}, {pipeline_mode = #tpu.pipeline_mode<synchronous>, transform_indices = @transform_1, window_bounds = array<i64: 256, 1024>}, {pipeline_mode = #tpu.pipeline_mode<synchronous>, transform_indices = @transform_2, window_bounds = array<i64: 1, 1024>}, {pipeline_mode = #tpu.pipeline_mode<synchronous>, transform_indices = @transform_3, window_bounds = array<i64: 1024, 128>}, {pipeline_mode = #tpu.pipeline_mode<synchronous>, transform_indices = @transform_4, window_bounds = array<i64: 1, 128>}, {transform_indices = @transform_5, window_bounds = array<i64: 16, 128>}]} {
    %c0 = arith.constant 0 : index
    %c0_0 = arith.constant 0 : index
    %0 = vector.load %arg1[%c0, %c0_0] : memref<16x256xbf16, #tpu.memory_space<vmem>>, vector<16x256xbf16>
    %c0_1 = arith.constant 0 : index
    %c0_2 = arith.constant 0 : index
    %1 = vector.load %arg2[%c0_1, %c0_2] : memref<256x1024xbf16, #tpu.memory_space<vmem>>, vector<256x1024xbf16>
    %cst = arith.constant dense<0.000000e+00> : vector<16x1024xf32>
    %2 = tpu.matmul %0, %1, %cst {dimension_numbers = #tpu.dot_dimension_numbers<[1], [0], [0], [1], [0, 0, 1, 1], [], []>} : vector<16x256xbf16>, vector<256x1024xbf16>, vector<16x1024xf32> -> vector<16x1024xf32>
    %c0_3 = arith.constant 0 : index
    %c0_4 = arith.constant 0 : index
    %3 = vector.load %arg3[%c0_3, %c0_4] : memref<1x1024xf32, #tpu.memory_space<vmem>>, vector<1x1024xf32>
    %4 = vector.broadcast %3 : vector<1x1024xf32> to vector<16x1024xf32>
    %5 = arith.addf %2, %4 : vector<16x1024xf32>
    %cst_5 = arith.constant 0.000000e+00 : f32
    %6 = vector.broadcast %cst_5 : f32 to vector<16x1024xf32>
    %7 = arith.maximumf %5, %6 : vector<16x1024xf32>
    %8 = arith.truncf %7 : vector<16x1024xf32> to vector<16x1024xbf16>
    %c0_6 = arith.constant 0 : index
    %c0_7 = arith.constant 0 : index
    %9 = vector.load %arg4[%c0_6, %c0_7] : memref<1024x128xbf16, #tpu.memory_space<vmem>>, vector<1024x128xbf16>
    %cst_8 = arith.constant dense<0.000000e+00> : vector<16x128xf32>
    %10 = tpu.matmul %8, %9, %cst_8 {dimension_numbers = #tpu.dot_dimension_numbers<[1], [0], [0], [1], [0, 0, 1, 1], [], []>} : vector<16x1024xbf16>, vector<1024x128xbf16>, vector<16x128xf32> -> vector<16x128xf32>
    %c0_9 = arith.constant 0 : index
    %c0_10 = arith.constant 0 : index
    %11 = vector.load %arg5[%c0_9, %c0_10] : memref<1x128xf32, #tpu.memory_space<vmem>>, vector<1x128xf32>
    %12 = vector.broadcast %11 : vector<1x128xf32> to vector<16x128xf32>
    %13 = arith.addf %10, %12 : vector<16x128xf32>
    %c0_11 = arith.constant 0 : index
    %c0_12 = arith.constant 0 : index
    %14 = vector.load %arg6[%c0_11, %c0_12] : memref<16x128xf32, #tpu.memory_space<vmem>>, vector<16x128xf32>
    tpu.vector_store %arg6[%c0_11, %c0_12], %13 {strides = array<i32>} : memref<16x128xf32, #tpu.memory_space<vmem>>, vector<16x128xf32>,
    return
  }
  func.func @transform_0(%arg0: i32) -> (i32, i32) {
    %c0_i32 = arith.constant 0 : i32
    %c0_i32_0 = arith.constant 0 : i32
    return %arg0, %c0_i32 : i32, i32
  }
  func.func @transform_1(%arg0: i32) -> (i32, i32) {
    %c0_i32 = arith.constant 0 : i32
    %c0_i32_0 = arith.constant 0 : i32
    %c0_i32_1 = arith.constant 0 : i32
    return %c0_i32, %c0_i32_0 : i32, i32
  }
  func.func @transform_2(%arg0: i32) -> (i32, i32) {
    %c0_i32 = arith.constant 0 : i32
    %c0_i32_0 = arith.constant 0 : i32
    %c0_i32_1 = arith.constant 0 : i32
    return %c0_i32, %c0_i32_0 : i32, i32
  }
  func.func @transform_3(%arg0: i32) -> (i32, i32) {
    %c0_i32 = arith.constant 0 : i32
    %c0_i32_0 = arith.constant 0 : i32
    %c0_i32_1 = arith.constant 0 : i32
    return %c0_i32, %c0_i32_0 : i32, i32
  }
  func.func @transform_4(%arg0: i32) -> (i32, i32) {
    %c0_i32 = arith.constant 0 : i32
    %c0_i32_0 = arith.constant 0 : i32
    %c0_i32_1 = arith.constant 0 : i32
    return %c0_i32, %c0_i32_0 : i32, i32
  }
  func.func @transform_5(%arg0: i32) -> (i32, i32) {
    %c0_i32 = arith.constant 0 : i32
    %c0_i32_0 = arith.constant 0 : i32
    return %arg0, %c0_i32 : i32, i32
  }
}

</mosaic_0001>

<bundles_post_ra>
// kernel: b1e_pred_model_ffn.1
= control target key start
LH: loop header
LB: loop body
LE: loop exit
PB: predicated region body
PF: predicated region fallthrough
CT: control target
= control target key end

     0   :  { %10 = vsyncpa [#allocation3], 0  ;;  %s2272_s0 = inlined_call_operand.vmem [shape: bf16[16,256], index: 0, kind: input, shape index: {}]   ;;  %s2273_s1 = inlined_call_operand.hbm [shape: bf16[256,1024], index: 1, kind: input, shape index: {}]   ;;  %s2274_s2 = inlined_call_operand.vmem [shape: f32[1,1024], index: 2, kind: input, shape index: {}]   ;;  %s2275_s3 = inlined_call_operand.hbm [shape: bf16[1024,128], index: 3, kind: input, shape index: {}]   ;;  %s2276_s4 = inlined_call_operand.vmem [shape: f32[1,128], index: 4, kind: input, shape index: {}]   ;;  %s2277_s5 = inlined_call_operand.vmem [shape: f32[16,128], index: 5, kind: output, shape index: {}]  }
   0x1   :  { %11 = vsyncpa [#allocation5], 0  ;;  %s2162_s18 = smov [#allocation2]   ;;  %s2114_s22 = scalar_lea.hbm %s2273_s1, 16384 }
   0x2   :  { %s19_s19 = sshll.u32 %s2162_s18, 4  ;;  %p2115_p0 = scmp.ne.s32.totalorder %s2273_s1, %s2114_s22  ;;  %s20_s19 = int_to_ptr.vmem [resolvable:$true] %s19_s19 }
   0x3   :  { %p2118_p1 = scmp.lt.u32.totalorder %s2114_s22, %s2273_s1 }
   0x5   :  { %p2120_p2 = pnand %p2118_p1, %p2115_p0 }
   0x7   :  { %2123 = shalt.err (!%p2120_p2)
}
   0x8   :  { %s2124_s27 = scalar_lea.vmem %s20_s19, 16384  ;;  %p2129_p4 = scmp.lt.s32.totalorder %s20_s19, %s20_s19 }
   0x9   :  { %p2125_p3 = scmp.ne.s32.totalorder %s20_s19, %s2124_s27  ;;  %p2130_p5 = scmp.lt.s32.totalorder %s2124_s27, %s2124_s27 }
   0xb   :  { %p2131_p6 = por %p2130_p5, %p2129_p4 }
   0xd   :  { %p2132_p7 = pnand %p2131_p6, %p2125_p3 }
   0xf   :  { %2135 = shalt.err (!%p2132_p7)
}
  0x10   :  { %s2163_s28 = smov 512   ;;  %s2164_s29 = smov 32  }
  0x11   :  { %25 = dma.hbm_to_vmem [thread:$0]  %s2273_s1, 16384, %s20_s19, [#allocation3], %s2163_s28, %s2163_s28, %s2164_s29  }
  0x12   :  { %s2165_s7 = smov [#allocation4]   ;;  %s2136_s11 = scalar_lea.hbm %s2275_s3, 8192 }
  0x13   :  { %s33_s8 = sshll.u32 %s2165_s7, 4  ;;  %p2137_p8 = scmp.ne.s32.totalorder %s2275_s3, %s2136_s11  ;;  %s34_s8 = int_to_ptr.vmem [resolvable:$true] %s33_s8 }
  0x14   :  { %p2140_p9 = scmp.lt.u32.totalorder %s2136_s11, %s2275_s3 }
  0x16   :  { %p2142_p10 = pnand %p2140_p9, %p2137_p8 }
  0x18   :  { %2145 = shalt.err (!%p2142_p10)
}
  0x19   :  { %s2146_s16 = scalar_lea.vmem %s34_s8, 8192  ;;  %p2151_p12 = scmp.lt.s32.totalorder %s34_s8, %s34_s8 }
  0x1a   :  { %p2147_p11 = scmp.ne.s32.totalorder %s34_s8, %s2146_s16  ;;  %p2152_p13 = scmp.lt.s32.totalorder %s2146_s16, %s2146_s16 }
  0x1c   :  { %p2153_p0 = por %p2152_p13, %p2151_p12 }
  0x1e   :  { %p2154_p1 = pnand %p2153_p0, %p2147_p11 }
  0x20   :  { %2157 = shalt.err (!%p2154_p1)
}
  0x21   :  { %s2166_s1 = smov 64   ;;  %s2167_s17 = smov 4  }
  0x22   :  { %39 = dma.hbm_to_vmem [thread:$0]  %s2275_s3, 8192, %s34_s8, [#allocation5], %s2166_s1, %s2166_s1, %s2167_s17  }
  0x23   :  { %2158 = dma.done.wait [#allocation3], 16384  }
  0x24   :  { %2159 = vsyncadd [#allocation3], 4294950912 }
  0x25   :  { %2160 = dma.done.wait [#allocation5], 8192  }
  0x26   :  { %2161 = vsyncadd [#allocation5], 4294959104  ;;  %v51_v0 = vld [vmem:[#allocation2] sm:$0xff]  ;;  %v52_v2 = vld [vmem:[#allocation2 + $0x8] sm:$0xff] }
  0x27   :  { %v55_v1 = vld [vmem:[#allocation2 + $0x20] sm:$0xff]  ;;  %v56_v4 = vld [vmem:[#allocation2 + $0x28] sm:$0xff] }
  0x28   :  { %v1761_v3 = vcombine.high %v51_v0, %v55_v1  ;;  %v1760_v5 = vcombine.low %v51_v0, %v55_v1  ;;  %v59_v6 = vld [vmem:[#allocation2 + $0x40] sm:$0xff]  ;;  %v1763_v8 = vcombine.high %v52_v2, %v56_v4  ;;  %v1762_v9 = vcombine.low %v52_v2, %v56_v4  ;;  %v60_v11 = vld [vmem:[#allocation2 + $0x48] sm:$0xff] }
  0x29   :  { %v63_v7 = vld [vmem:[#allocation2 + $0x60] sm:$0xff]  ;;  %v64_v12 = vld [vmem:[#allocation2 + $0x68] sm:$0xff] }
  0x2a   :  { %v1769_v10 = vcombine.high %v59_v6, %v63_v7  ;;  %v67_v13 = vld [vmem:[#allocation2 + $0x80] sm:$0xff]  ;;  %871 = vmatprep.subr.bf16.mxu0 %v1761_v3  ;;  %v1771_v14 = vcombine.high %v60_v11, %v64_v12  ;;  %v68_v16 = vld [vmem:[#allocation2 + $0x88] sm:$0xff]  ;;  %914 = vmatprep.subr.bf16.mxu1 %v1763_v8  ;;  %v1768_v18 = vcombine.low %v59_v6, %v63_v7 }
  0x2b   :  { %v71_v15 = vld [vmem:[#allocation2 + $0xa0] sm:$0xff]  ;;  %v72_v17 = vld [vmem:[#allocation2 + $0xa8] sm:$0xff]  ;;  %872 = vmatpush1.bf16.msra.mxu0 %v1760_v5  ;;  %915 = vmatpush1.bf16.msra.mxu1 %v1762_v9  ;;  %v1770_v19 = vcombine.low %v60_v11, %v64_v12 }
  0x2c   :  { %873 = vmatprep.subr.bf16.mxu0 %v1769_v10  ;;  %v1777_v20 = vcombine.high %v67_v13, %v71_v15  ;;  %916 = vmatprep.subr.bf16.mxu1 %v1771_v14  ;;  %v1779_v21 = vcombine.high %v68_v16, %v72_v17  ;;  %v75_v22 = vld [vmem:[#allocation2 + $0xc0] sm:$0xff]  ;;  %v76_v24 = vld [vmem:[#allocation2 + $0xc8] sm:$0xff]  ;;  %v1776_v26 = vcombine.low %v67_v13, %v71_v15 }
  0x2d   :  { %v79_v23 = vld [vmem:[#allocation2 + $0xe0] sm:$0xff]  ;;  %v80_v25 = vld [vmem:[#allocation2 + $0xe8] sm:$0xff]  ;;  %v1778_v27 = vcombine.low %v68_v16, %v72_v17 }
  0x2e   :  { %v1785_v28 = vcombine.high %v75_v22, %v79_v23  ;;  %v1787_v29 = vcombine.high %v76_v24, %v80_v25  ;;  %v83_v30 = vld [vmem:[#allocation2 + $0x100] sm:$0xff]  ;;  %v84_v32 = vld [vmem:[#allocation2 + $0x108] sm:$0xff]  ;;  %v1784_v34 = vcombine.low %v75_v22, %v79_v23  ;;  %v1786_v35 = vcombine.low %v76_v24, %v80_v25 }
  0x2f   :  { %874 = vmatpush1.bf16.msra.mxu0 %v1768_v18  ;;  %917 = vmatpush1.bf16.msra.mxu1 %v1770_v19  ;;  %v87_v31 = vld [vmem:[#allocation2 + $0x120] sm:$0xff]  ;;  %v88_v33 = vld [vmem:[#allocation2 + $0x128] sm:$0xff] }
  0x30   :  { %875 = vmatprep.subr.bf16.mxu0 %v1777_v20  ;;  %918 = vmatprep.subr.bf16.mxu1 %v1779_v21  ;;  %v1793_v36 = vcombine.high %v83_v30, %v87_v31  ;;  %v1795_v37 = vcombine.high %v84_v32, %v88_v33  ;;  %v91_v38 = vld [vmem:[#allocation2 + $0x140] sm:$0xff]  ;;  %v92_v40 = vld [vmem:[#allocation2 + $0x148] sm:$0xff]  ;;  %v1792_v42 = vcombine.low %v83_v30, %v87_v31 }
  0x31   :  { %v95_v39 = vld [vmem:[#allocation2 + $0x160] sm:$0xff]  ;;  %v96_v41 = vld [vmem:[#allocation2 + $0x168] sm:$0xff]  ;;  %v1794_v43 = vcombine.low %v84_v32, %v88_v33 }
  0x32   :  { %v1801_v44 = vcombine.high %v91_v38, %v95_v39  ;;  %v1803_v45 = vcombine.high %v92_v40, %v96_v41  ;;  %v99_v46 = vld [vmem:[#allocation2 + $0x180] sm:$0xff]  ;;  %v100_v48 = vld [vmem:[#allocation2 + $0x188] sm:$0xff]  ;;  %v1800_v50 = vcombine.low %v91_v38, %v95_v39  ;;  %v1802_v51 = vcombine.low %v92_v40, %v96_v41 }
  0x33   :  { %876 = vmatpush1.bf16.msra.mxu0 %v1776_v26  ;;  %919 = vmatpush1.bf16.msra.mxu1 %v1778_v27  ;;  %v103_v47 = vld [vmem:[#allocation2 + $0x1a0] sm:$0xff]  ;;  %v104_v49 = vld [vmem:[#allocation2 + $0x1a8] sm:$0xff] }
  0x34   :  { %877 = vmatprep.subr.bf16.mxu0 %v1785_v28  ;;  %920 = vmatprep.subr.bf16.mxu1 %v1787_v29  ;;  %v1809_v52 = vcombine.high %v99_v46, %v103_v47  ;;  %v1811_v53 = vcombine.high %v100_v48, %v104_v49  ;;  %v107_v54 = vld [vmem:[#allocation2 + $0x1c0] sm:$0xff]  ;;  %v108_v57 = vld [vmem:[#allocation2 + $0x1c8] sm:$0xff]  ;;  %v1808_v59 = vcombine.low %v99_v46, %v103_v47 }
  0x35   :  { %v111_v55 = vld [vmem:[#allocation2 + $0x1e0] sm:$0xff]  ;;  %v112_v58 = vld [vmem:[#allocation2 + $0x1e8] sm:$0xff]  ;;  %v1810_v60 = vcombine.low %v100_v48, %v104_v49 }
  0x36   :  { %v2225_v56 = vld [vmem:[%s2272_s0 + $0x4] ss:$8 sps:$4 sm:$0xff]   ;;  %v1817_v61 = vcombine.high %v107_v54, %v111_v55  ;;  %v1819_v62 = vcombine.high %v108_v57, %v112_v58  ;;  %v1816_v3 = vcombine.low %v107_v54, %v111_v55  ;;  %v1818_v4 = vcombine.low %v108_v57, %v112_v58 }
  0x37   :  { %878 = vmatpush1.bf16.msra.mxu0 %v1784_v34  ;;  %921 = vmatpush1.bf16.msra.mxu1 %v1786_v35  ;;  %v115_v63 = vld [vmem:[#allocation2 + $0x200] sm:$0xff]  ;;  %v116_v1 = vld [vmem:[#allocation2 + $0x208] sm:$0xff] }
  0x38   :  { %879 = vmatprep.subr.bf16.mxu0 %v1793_v36  ;;  %922 = vmatprep.subr.bf16.mxu1 %v1795_v37  ;;  %v119_v0 = vld [vmem:[#allocation2 + $0x220] sm:$0xff]  ;;  %v120_v2 = vld [vmem:[#allocation2 + $0x228] sm:$0xff] }
  0x39   :  { %903 = vmatprep.mubr.bf16.mxu0 %v2225_v56  ;;  %946 = vmatprep.mubr.bf16.mxu1 %v2225_v56  ;;  %v1825_v5 = vcombine.high %v115_v63, %v119_v0  ;;  %v1827_v6 = vcombine.high %v116_v1, %v120_v2  ;;  %v123_v7 = vld [vmem:[#allocation2 + $0x240] sm:$0xff]  ;;  %v124_v9 = vld [vmem:[#allocation2 + $0x248] sm:$0xff]  ;;  %v1824_v11 = vcombine.low %v115_v63, %v119_v0  ;;  %v57_v0 = vld [vmem:[#allocation2 + $0x30] sm:$0xff] }
  0x3a   :  { %v127_v8 = vld [vmem:[#allocation2 + $0x260] sm:$0xff]  ;;  %v128_v10 = vld [vmem:[#allocation2 + $0x268] sm:$0xff]  ;;  %v1826_v12 = vcombine.low %v116_v1, %v120_v2  ;;  %v54_v2 = vld [vmem:[#allocation2 + $0x18] sm:$0xff] }
  0x3b   :  { %880 = vmatpush1.bf16.msra.mxu0 %v1792_v42  ;;  %923 = vmatpush1.bf16.msra.mxu1 %v1794_v43  ;;  %v1833_v13 = vcombine.high %v123_v7, %v127_v8  ;;  %v1835_v14 = vcombine.high %v124_v9, %v128_v10  ;;  %v131_v15 = vld [vmem:[#allocation2 + $0x280] sm:$0xff]  ;;  %v132_v17 = vld [vmem:[#allocation2 + $0x288] sm:$0xff]  ;;  %v1832_v19 = vcombine.low %v123_v7, %v127_v8 }
  0x3c   :  { %881 = vmatprep.subr.bf16.mxu0 %v1801_v44  ;;  %924 = vmatprep.subr.bf16.mxu1 %v1803_v45  ;;  %v135_v16 = vld [vmem:[#allocation2 + $0x2a0] sm:$0xff]  ;;  %v136_v18 = vld [vmem:[#allocation2 + $0x2a8] sm:$0xff]  ;;  %v1834_v20 = vcombine.low %v124_v9, %v128_v10  ;;  %v65_v9 = vld [vmem:[#allocation2 + $0x70] sm:$0xff] }
  0x3d   :  { %v1841_v21 = vcombine.high %v131_v15, %v135_v16  ;;  %v1843_v22 = vcombine.high %v132_v17, %v136_v18  ;;  %v139_v23 = vld [vmem:[#allocation2 + $0x2c0] sm:$0xff]  ;;  %v140_v25 = vld [vmem:[#allocation2 + $0x2c8] sm:$0xff]  ;;  %v1840_v27 = vcombine.low %v131_v15, %v135_v16  ;;  %v1842_v28 = vcombine.low %v132_v17, %v136_v18  ;;  %v73_v15 = vld [vmem:[#allocation2 + $0xb0] sm:$0xff] }
  0x3e   :  { %v143_v24 = vld [vmem:[#allocation2 + $0x2e0] sm:$0xff]  ;;  %v144_v26 = vld [vmem:[#allocation2 + $0x2e8] sm:$0xff]  ;;  %v70_v18 = vld [vmem:[#allocation2 + $0x98] sm:$0xff] }
  0x3f   :  { %882 = vmatpush1.bf16.msra.mxu0 %v1800_v50  ;;  %925 = vmatpush1.bf16.msra.mxu1 %v1802_v51  ;;  %v1849_v29 = vcombine.high %v139_v23, %v143_v24  ;;  %v1851_v30 = vcombine.high %v140_v25, %v144_v26  ;;  %v147_v31 = vld [vmem:[#allocation2 + $0x300] sm:$0xff]  ;;  %v148_v33 = vld [vmem:[#allocation2 + $0x308] sm:$0xff]  ;;  %v1848_v35 = vcombine.low %v139_v23, %v143_v24  ;;  %v81_v23 = vld [vmem:[#allocation2 + $0xf0] sm:$0xff] }
  0x40   :  { %883 = vmatprep.subr.bf16.mxu0 %v1809_v52  ;;  %926 = vmatprep.subr.bf16.mxu1 %v1811_v53  ;;  %v151_v32 = vld [vmem:[#allocation2 + $0x320] sm:$0xff]  ;;  %v152_v34 = vld [vmem:[#allocation2 + $0x328] sm:$0xff]  ;;  %v1850_v37 = vcombine.low %v140_v25, %v144_v26  ;;  %v78_v26 = vld [vmem:[#allocation2 + $0xd8] sm:$0xff] }
  0x41   :  { %v155_v36 = vld [vmem:[#allocation2 + $0x340] sm:$0xff]  ;;  %v1857_v38 = vcombine.high %v147_v31, %v151_v32  ;;  %v1859_v40 = vcombine.high %v148_v33, %v152_v34  ;;  %v156_v41 = vld [vmem:[#allocation2 + $0x348] sm:$0xff]  ;;  %v1856_v43 = vcombine.low %v147_v31, %v151_v32  ;;  %v1858_v45 = vcombine.low %v148_v33, %v152_v34  ;;  %v89_v31 = vld [vmem:[#allocation2 + $0x130] sm:$0xff] }
  0x42   :  { %v159_v39 = vld [vmem:[#allocation2 + $0x360] sm:$0xff]  ;;  %v160_v42 = vld [vmem:[#allocation2 + $0x368] sm:$0xff]  ;;  %v86_v34 = vld [vmem:[#allocation2 + $0x118] sm:$0xff] }
  0x43   :  { %884 = vmatpush1.bf16.msra.mxu0 %v1808_v59  ;;  %927 = vmatpush1.bf16.msra.mxu1 %v1810_v60  ;;  %v163_v44 = vld [vmem:[#allocation2 + $0x380] sm:$0xff]  ;;  %v1865_v46 = vcombine.high %v155_v36, %v159_v39  ;;  %v1867_v48 = vcombine.high %v156_v41, %v160_v42  ;;  %v164_v49 = vld [vmem:[#allocation2 + $0x388] sm:$0xff]  ;;  %v1864_v51 = vcombine.low %v155_v36, %v159_v39  ;;  %v97_v39 = vld [vmem:[#allocation2 + $0x170] sm:$0xff] }
  0x44   :  { %885 = vmatprep.subr.bf16.mxu0 %v1817_v61  ;;  %928 = vmatprep.subr.bf16.mxu1 %v1819_v62  ;;  %v167_v47 = vld [vmem:[#allocation2 + $0x3a0] sm:$0xff]  ;;  %v168_v50 = vld [vmem:[#allocation2 + $0x3a8] sm:$0xff]  ;;  %v1866_v53 = vcombine.low %v156_v41, %v160_v42  ;;  %v53_v61 = vld [vmem:[#allocation2 + $0x10] sm:$0xff] }
  0x45   :  { %v171_v52 = vld [vmem:[#allocation2 + $0x3c0] sm:$0xff]  ;;  %v1873_v54 = vcombine.high %v163_v44, %v167_v47  ;;  %v1875_v57 = vcombine.high %v164_v49, %v168_v50  ;;  %v172_v58 = vld [vmem:[#allocation2 + $0x3c8] sm:$0xff]  ;;  %v1872_v60 = vcombine.low %v163_v44, %v167_v47  ;;  %v1874_v62 = vcombine.low %v164_v49, %v168_v50  ;;  %v94_v41 = vld [vmem:[#allocation2 + $0x158] sm:$0xff] }
  0x46   :  { %v175_v55 = vld [vmem:[#allocation2 + $0x3e0] sm:$0xff]  ;;  %v176_v59 = vld [vmem:[#allocation2 + $0x3e8] sm:$0xff]  ;;  %v1765_v8 = vcombine.high %v53_v61, %v57_v0  ;;  %v98_v42 = vld [vmem:[#allocation2 + $0x178] sm:$0xff] }
  0x47   :  { %886 = vmatpush1.bf16.msra.mxu0 %v1816_v3  ;;  %929 = vmatpush1.bf16.msra.mxu1 %v1818_v4  ;;  %v1881_v63 = vcombine.high %v171_v52, %v175_v55  ;;  %v1883_v1 = vcombine.high %v172_v58, %v176_v59  ;;  %v58_v3 = vld [vmem:[#allocation2 + $0x38] sm:$0xff]  ;;  %v1880_v4 = vcombine.low %v171_v52, %v175_v55  ;;  %v2232_v7 = vld [vmem:[%s2272_s0] ss:$8 sps:$4 sm:$0xff]  }
  0x48   :  { %887 = vmatprep.subr.bf16.mxu0 %v1825_v5  ;;  %930 = vmatprep.subr.bf16.mxu1 %v1827_v6  ;;  %v61_v5 = vld [vmem:[#allocation2 + $0x50] sm:$0xff]  ;;  %v1882_v6 = vcombine.low %v172_v58, %v176_v59  ;;  %v1767_v10 = vcombine.high %v54_v2, %v58_v3  ;;  %v1766_v16 = vcombine.low %v54_v2, %v58_v3  ;;  %v102_v49 = vld [vmem:[#allocation2 + $0x198] sm:$0xff] }
  0x49   :  { %v1773_v17 = vcombine.high %v61_v5, %v65_v9  ;;  %v106_v50 = vld [vmem:[#allocation2 + $0x1b8] sm:$0xff]  ;;  %v1806_v55 = vcombine.low %v94_v41, %v98_v42 }
  0x4a   :  { %v110_v58 = vld [vmem:[#allocation2 + $0x1d8] sm:$0xff] }
  0x4b   :  { %888 = vmatpush1.bf16.msra.mxu0 %v1824_v11  ;;  %931 = vmatpush1.bf16.msra.mxu1 %v1826_v12  ;;  %v62_v11 = vld [vmem:[#allocation2 + $0x58] sm:$0xff] }
  0x4c   :  { %889 = vmatprep.subr.bf16.mxu0 %v1833_v13  ;;  %932 = vmatprep.subr.bf16.mxu1 %v1835_v14  ;;  %v66_v12 = vld [vmem:[#allocation2 + $0x78] sm:$0xff]  ;;  %v1764_v13 = vcombine.low %v53_v61, %v57_v0  ;;  %v69_v14 = vld [vmem:[#allocation2 + $0x90] sm:$0xff]  ;;  %v1814_v0 = vcombine.low %v102_v49, %v106_v50 }
  0x4d   :  { %v1774_v24 = vcombine.low %v62_v11, %v66_v12  ;;  %v1781_v25 = vcombine.high %v69_v14, %v73_v15  ;;  %v114_v59 = vld [vmem:[#allocation2 + $0x1f8] sm:$0xff] }
  0x4e   :  { %v118_v2 = vld [vmem:[#allocation2 + $0x218] sm:$0xff] }
  0x4f   :  { %890 = vmatpush1.bf16.msra.mxu0 %v1832_v19  ;;  %933 = vmatpush1.bf16.msra.mxu1 %v1834_v20  ;;  %v1775_v19 = vcombine.high %v62_v11, %v66_v12  ;;  %v74_v20 = vld [vmem:[#allocation2 + $0xb8] sm:$0xff]  ;;  %v129_v11 = vld [vmem:[#allocation2 + $0x270] sm:$0xff] }
  0x50   :  { %891 = vmatprep.subr.bf16.mxu0 %v1841_v21  ;;  %934 = vmatprep.subr.bf16.mxu1 %v1843_v22  ;;  %v1772_v21 = vcombine.low %v61_v5, %v65_v9  ;;  %v77_v22 = vld [vmem:[#allocation2 + $0xd0] sm:$0xff]  ;;  %v1782_v32 = vcombine.low %v70_v18, %v74_v20  ;;  %v122_v3 = vld [vmem:[#allocation2 + $0x238] sm:$0xff] }
  0x51   :  { %v1789_v33 = vcombine.high %v77_v22, %v81_v23  ;;  %v1831_v9 = vcombine.high %v118_v2, %v122_v3  ;;  %v126_v12 = vld [vmem:[#allocation2 + $0x258] sm:$0xff] }
  0x53   :  { %892 = vmatpush1.bf16.msra.mxu0 %v1840_v27  ;;  %935 = vmatpush1.bf16.msra.mxu1 %v1842_v28  ;;  %v82_v27 = vld [vmem:[#allocation2 + $0xf8] sm:$0xff]  ;;  %v1783_v28 = vcombine.high %v70_v18, %v74_v20  ;;  %v133_v18 = vld [vmem:[#allocation2 + $0x290] sm:$0xff] }
  0x54   :  { %893 = vmatprep.subr.bf16.mxu0 %v1849_v29  ;;  %936 = vmatprep.subr.bf16.mxu1 %v1851_v30  ;;  %v1780_v29 = vcombine.low %v69_v14, %v73_v15  ;;  %v85_v30 = vld [vmem:[#allocation2 + $0x110] sm:$0xff]  ;;  %v1791_v36 = vcombine.high %v78_v26, %v82_v27  ;;  %v1830_v15 = vcombine.low %v118_v2, %v122_v3  ;;  %v134_v20 = vld [vmem:[#allocation2 + $0x298] sm:$0xff] }
  0x55   :  { %v1796_v44 = vcombine.low %v85_v30, %v89_v31 }
  0x57   :  { %894 = vmatpush1.bf16.msra.mxu0 %v1848_v35  ;;  %937 = vmatpush1.bf16.msra.mxu1 %v1850_v37  ;;  %v90_v35 = vld [vmem:[#allocation2 + $0x138] sm:$0xff]  ;;  %v1788_v37 = vcombine.low %v77_v22, %v81_v23 }
  0x58   :  { %895 = vmatprep.subr.bf16.mxu0 %v1857_v38  ;;  %938 = vmatprep.subr.bf16.mxu1 %v1859_v40  ;;  %v93_v38 = vld [vmem:[#allocation2 + $0x150] sm:$0xff]  ;;  %v1790_v40 = vcombine.low %v78_v26, %v82_v27  ;;  %v1798_v47 = vcombine.low %v86_v34, %v90_v35 }
  0x59   :  { %v1804_v52 = vcombine.low %v93_v38, %v97_v39  ;;  %v141_v26 = vld [vmem:[#allocation2 + $0x2d0] sm:$0xff] }
  0x5a   :  { %v145_v27 = vld [vmem:[#allocation2 + $0x2f0] sm:$0xff] }
  0x5b   :  { %896 = vmatpush1.bf16.msra.mxu0 %v1856_v43  ;;  %939 = vmatpush1.bf16.msra.mxu1 %v1858_v45  ;;  %v1799_v43 = vcombine.high %v86_v34, %v90_v35  ;;  %v101_v45 = vld [vmem:[#allocation2 + $0x190] sm:$0xff] }
  0x5c   :  { %897 = vmatprep.subr.bf16.mxu0 %v1865_v46  ;;  %940 = vmatprep.subr.bf16.mxu1 %v1867_v48  ;;  %v105_v46 = vld [vmem:[#allocation2 + $0x1b0] sm:$0xff]  ;;  %v1805_v48 = vcombine.high %v93_v38, %v97_v39  ;;  %v1852_v38 = vcombine.low %v141_v26, %v145_v27 }
  0x5d   :  { %v1812_v61 = vcombine.low %v101_v45, %v105_v46  ;;  %v149_v34 = vld [vmem:[#allocation2 + $0x310] sm:$0xff] }
  0x5e   :  { %v153_v35 = vld [vmem:[#allocation2 + $0x330] sm:$0xff] }
  0x5f   :  { %898 = vmatpush1.bf16.msra.mxu0 %v1864_v51  ;;  %941 = vmatpush1.bf16.msra.mxu1 %v1866_v53  ;;  %v1807_v51 = vcombine.high %v94_v41, %v98_v42  ;;  %v109_v53 = vld [vmem:[#allocation2 + $0x1d0] sm:$0xff] }
  0x60   :  { %899 = vmatprep.subr.bf16.mxu0 %v1873_v54  ;;  %942 = vmatprep.subr.bf16.mxu1 %v1875_v57  ;;  %v113_v54 = vld [vmem:[#allocation2 + $0x1f0] sm:$0xff]  ;;  %v1813_v57 = vcombine.high %v101_v45, %v105_v46  ;;  %v1860_v45 = vcombine.low %v149_v34, %v153_v35 }
  0x61   :  { %v1820_v5 = vcombine.low %v109_v53, %v113_v54  ;;  %v157_v41 = vld [vmem:[#allocation2 + $0x350] sm:$0xff] }
  0x62   :  { %v161_v42 = vld [vmem:[#allocation2 + $0x370] sm:$0xff] }
  0x63   :  { %900 = vmatpush1.bf16.msra.mxu0 %v1872_v60  ;;  %943 = vmatpush1.bf16.msra.mxu1 %v1874_v62  ;;  %v1815_v60 = vcombine.high %v102_v49, %v106_v50  ;;  %v117_v62 = vld [vmem:[#allocation2 + $0x210] sm:$0xff] }
  0x64   :  { %901 = vmatprep.subr.bf16.mxu0 %v1881_v63  ;;  %944 = vmatprep.subr.bf16.mxu1 %v1883_v1  ;;  %v121_v63 = vld [vmem:[#allocation2 + $0x230] sm:$0xff]  ;;  %v1821_v1 = vcombine.high %v109_v53, %v113_v54  ;;  %v1868_v53 = vcombine.low %v157_v41, %v161_v42 }
  0x65   :  { %v1828_v14 = vcombine.low %v117_v62, %v121_v63  ;;  %v165_v49 = vld [vmem:[#allocation2 + $0x390] sm:$0xff] }
  0x66   :  { %v169_v50 = vld [vmem:[#allocation2 + $0x3b0] sm:$0xff] }
  0x67   :  { %902 = vmatpush1.bf16.msra.mxu0 %v1880_v4  ;;  %945 = vmatpush1.bf16.msra.mxu1 %v1882_v6  ;;  %v1823_v4 = vcombine.high %v110_v58, %v114_v59  ;;  %v1822_v6 = vcombine.low %v110_v58, %v114_v59  ;;  %v173_v58 = vld [vmem:[#allocation2 + $0x3d0] sm:$0xff] }
  0x68   :  { %957 = vmatprep.subr.bf16.mxu0 %v1765_v8  ;;  %1000 = vmatprep.subr.bf16.mxu1 %v1767_v10  ;;  %v1829_v8 = vcombine.high %v117_v62, %v121_v63  ;;  %v125_v10 = vld [vmem:[#allocation2 + $0x250] sm:$0xff]  ;;  %v1876_v62 = vcombine.low %v165_v49, %v169_v50 }
  0x69   :  { %v1836_v22 = vcombine.low %v125_v10, %v129_v11  ;;  %v177_v59 = vld [vmem:[#allocation2 + $0x3f0] sm:$0xff] }
  0x6a   :  { %904 = vmatmul.mubr.bf16.vlgmr.msra.gmra.mrb[0].mxu0 %v2232_v7  ;;  %947 = vmatmul.mubr.bf16.vlgmr.msra.gmra.mrb[0].mxu1 %v2232_v7  ;;  %v1884_v2 = vcombine.low %v173_v58, %v177_v59 }
  0x6b   :  { %958 = vmatpush1.bf16.msra.mxu0 %v1764_v13  ;;  %1001 = vmatpush1.bf16.msra.mxu1 %v1766_v16  ;;  %v130_v13 = vld [vmem:[#allocation2 + $0x278] sm:$0xff]  ;;  %v1837_v16 = vcombine.high %v125_v10, %v129_v11  ;;  %v2055_v10 = vld [vmem:[#allocation4 + $0xc8] sm:$0xff]  }
  0x6c   :  { %959 = vmatprep.subr.bf16.mxu0 %v1773_v17  ;;  %1002 = vmatprep.subr.bf16.mxu1 %v1775_v19  ;;  %v1839_v17 = vcombine.high %v126_v12, %v130_v13  ;;  %v137_v19 = vld [vmem:[#allocation2 + $0x2b0] sm:$0xff]  ;;  %v1838_v23 = vcombine.low %v126_v12, %v130_v13  ;;  %v2056_v11 = vld [vmem:[#allocation4 + $0x8] sm:$0xff]  }
  0x6d   :  { %989 = vmatprep.mubr.bf16.mxu0 %v2225_v56  ;;  %1032 = vmatprep.mubr.bf16.mxu1 %v2225_v56  ;;  %v1797_v56 = vcombine.high %v85_v30, %v89_v31  ;;  %v1844_v30 = vcombine.low %v133_v18, %v137_v19  ;;  %v2057_v12 = vld [vmem:[#allocation4 + $0x88] sm:$0xff]   ;;  %v2058_v13 = vld [vmem:[#allocation4 + $0x50] sm:$0xff]  }
  0x6f   :  { %960 = vmatpush1.bf16.msra.mxu0 %v1772_v21  ;;  %1003 = vmatpush1.bf16.msra.mxu1 %v1774_v24  ;;  %v138_v21 = vld [vmem:[#allocation2 + $0x2b8] sm:$0xff]  ;;  %v1845_v24 = vcombine.high %v133_v18, %v137_v19 }
  0x70   :  { %961 = vmatprep.subr.bf16.mxu0 %v1781_v25  ;;  %1004 = vmatprep.subr.bf16.mxu1 %v1783_v28  ;;  %v1847_v25 = vcombine.high %v134_v20, %v138_v21  ;;  %v142_v28 = vld [vmem:[#allocation2 + $0x2d8] sm:$0xff]  ;;  %v1846_v31 = vcombine.low %v134_v20, %v138_v21  ;;  %v2066_v20 = vld [vmem:[#allocation4 + $0x60] sm:$0xff]  }
  0x71   :  { %v2063_v18 = vld [vmem:[#allocation4 + $0xd8] sm:$0xff]   ;;  %v2067_v21 = vld [vmem:[#allocation4 + $0xe0] sm:$0xff]  }
  0x72   :  { %v2064_v19 = vld [vmem:[#allocation4 + $0x18] sm:$0xff]  }
  0x73   :  { %962 = vmatpush1.bf16.msra.mxu0 %v1780_v29  ;;  %1005 = vmatpush1.bf16.msra.mxu1 %v1782_v32  ;;  %v146_v29 = vld [vmem:[#allocation2 + $0x2f8] sm:$0xff]  ;;  %v1853_v32 = vcombine.high %v141_v26, %v145_v27  ;;  %v2072_v26 = vld [vmem:[#allocation4 + $0x28] sm:$0xff]  }
  0x74   :  { %963 = vmatprep.subr.bf16.mxu0 %v1789_v33  ;;  %1006 = vmatprep.subr.bf16.mxu1 %v1791_v36  ;;  %v1855_v33 = vcombine.high %v142_v28, %v146_v29  ;;  %v150_v36 = vld [vmem:[#allocation2 + $0x318] sm:$0xff]  ;;  %v1854_v39 = vcombine.low %v142_v28, %v146_v29  ;;  %v2073_v27 = vld [vmem:[#allocation4 + $0xa8] sm:$0xff]   ;;  %v2074_v28 = vld [vmem:[#allocation4 + $0x70] sm:$0xff]  }
  0x75   :  { %v2075_v29 = vld [vmem:[#allocation4 + $0xf0] sm:$0xff]  }
  0x77   :  { %964 = vmatpush1.bf16.msra.mxu0 %v1788_v37  ;;  %1007 = vmatpush1.bf16.msra.mxu1 %v1790_v40  ;;  %v154_v37 = vld [vmem:[#allocation2 + $0x338] sm:$0xff]  ;;  %v1861_v40 = vcombine.high %v149_v34, %v153_v35 }
  0x78   :  { %965 = vmatprep.subr.bf16.mxu0 %v1797_v56  ;;  %1008 = vmatprep.subr.bf16.mxu1 %v1799_v43  ;;  %v1863_v56 = vcombine.high %v150_v36, %v154_v37  ;;  %v158_v43 = vld [vmem:[#allocation2 + $0x358] sm:$0xff]  ;;  %v1862_v46 = vcombine.low %v150_v36, %v154_v37  ;;  %v2082_v36 = vld [vmem:[#allocation4 + $0x140] sm:$0xff]  }
  0x79   :  { %v2080_v34 = vld [vmem:[#allocation4 + $0x38] sm:$0xff]   ;;  %v2083_v37 = vld [vmem:[#allocation4 + $0x1c0] sm:$0xff]  }
  0x7a   :  { %v2081_v35 = vld [vmem:[#allocation4 + $0xb8] sm:$0xff]  }
  0x7b   :  { %966 = vmatpush1.bf16.msra.mxu0 %v1796_v44  ;;  %1009 = vmatpush1.bf16.msra.mxu1 %v1798_v47  ;;  %v162_v44 = vld [vmem:[#allocation2 + $0x378] sm:$0xff]  ;;  %v1869_v47 = vcombine.high %v157_v41, %v161_v42 }
  0x7c   :  { %967 = vmatprep.subr.bf16.mxu0 %v1805_v48  ;;  %1010 = vmatprep.subr.bf16.mxu1 %v1807_v51  ;;  %v1871_v48 = vcombine.high %v158_v43, %v162_v44  ;;  %v166_v51 = vld [vmem:[#allocation2 + $0x398] sm:$0xff]  ;;  %v1870_v54 = vcombine.low %v158_v43, %v162_v44 }
  0x7f   :  { %968 = vmatpush1.bf16.msra.mxu0 %v1804_v52  ;;  %1011 = vmatpush1.bf16.msra.mxu1 %v1806_v55  ;;  %v170_v52 = vld [vmem:[#allocation2 + $0x3b8] sm:$0xff]  ;;  %v1877_v55 = vcombine.high %v165_v49, %v169_v50 }
  0x80   :  { %969 = vmatprep.subr.bf16.mxu0 %v1813_v57  ;;  %1012 = vmatprep.subr.bf16.mxu1 %v1815_v60  ;;  %v1879_v57 = vcombine.high %v166_v51, %v170_v52  ;;  %v174_v60 = vld [vmem:[#allocation2 + $0x3d8] sm:$0xff]  ;;  %v1878_v63 = vcombine.low %v166_v51, %v170_v52 }
  0x83   :  { %970 = vmatpush1.bf16.msra.mxu0 %v1812_v61  ;;  %1013 = vmatpush1.bf16.msra.mxu1 %v1814_v0  ;;  %v178_v61 = vld [vmem:[#allocation2 + $0x3f8] sm:$0xff]  ;;  %v1885_v0 = vcombine.high %v173_v58, %v177_v59 }
  0x84   :  { %971 = vmatprep.subr.bf16.mxu0 %v1821_v1  ;;  %1014 = vmatprep.subr.bf16.mxu1 %v1823_v4  ;;  %v1887_v1 = vcombine.high %v174_v60, %v178_v61  ;;  %v1886_v3 = vcombine.low %v174_v60, %v178_v61  ;;  %v2050_v4 = vld [vmem:[#allocation4 + $0x40] sm:$0xff]  }
  0x87   :  { %972 = vmatpush1.bf16.msra.mxu0 %v1820_v5  ;;  %1015 = vmatpush1.bf16.msra.mxu1 %v1822_v6  ;;  %v2051_v5 = vld [vmem:[#allocation4 + $0xc0] sm:$0xff]  }
  0x88   :  { %973 = vmatprep.subr.bf16.mxu0 %v1829_v8  ;;  %1016 = vmatprep.subr.bf16.mxu1 %v1831_v9  ;;  %v2052_v6 = vld [vmem:[#allocation4] sm:$0xff]   ;;  %v2054_v9 = vld [vmem:[#allocation4 + $0x48] sm:$0xff]  }
  0x89   :  { %v2053_v8 = vld [vmem:[#allocation4 + $0x80] sm:$0xff]  }
  0x8b   :  { %974 = vmatpush1.bf16.msra.mxu0 %v1828_v14  ;;  %1017 = vmatpush1.bf16.msra.mxu1 %v1830_v15  ;;  %v2059_v14 = vld [vmem:[#allocation4 + $0xd0] sm:$0xff]  }
  0x8c   :  { %975 = vmatprep.subr.bf16.mxu0 %v1837_v16  ;;  %1018 = vmatprep.subr.bf16.mxu1 %v1839_v17  ;;  %v2060_v15 = vld [vmem:[#allocation4 + $0x10] sm:$0xff]   ;;  %v2062_v17 = vld [vmem:[#allocation4 + $0x58] sm:$0xff]  }
  0x8d   :  { %v2061_v16 = vld [vmem:[#allocation4 + $0x90] sm:$0xff]  }
  0x8f   :  { %976 = vmatpush1.bf16.msra.mxu0 %v1836_v22  ;;  %1019 = vmatpush1.bf16.msra.mxu1 %v1838_v23  ;;  %v2068_v22 = vld [vmem:[#allocation4 + $0x20] sm:$0xff]  }
  0x90   :  { %977 = vmatprep.subr.bf16.mxu0 %v1845_v24  ;;  %1020 = vmatprep.subr.bf16.mxu1 %v1847_v25  ;;  %v2069_v23 = vld [vmem:[#allocation4 + $0xa0] sm:$0xff]   ;;  %v2070_v24 = vld [vmem:[#allocation4 + $0x68] sm:$0xff]  }
  0x91   :  { %v2071_v25 = vld [vmem:[#allocation4 + $0xe8] sm:$0xff]  }
  0x93   :  { %978 = vmatpush1.bf16.msra.mxu0 %v1844_v30  ;;  %1021 = vmatpush1.bf16.msra.mxu1 %v1846_v31  ;;  %v2076_v30 = vld [vmem:[#allocation4 + $0x30] sm:$0xff]  }
  0x94   :  { %979 = vmatprep.subr.bf16.mxu0 %v1853_v32  ;;  %1022 = vmatprep.subr.bf16.mxu1 %v1855_v33  ;;  %v2077_v31 = vld [vmem:[#allocation4 + $0xb0] sm:$0xff]   ;;  %v2078_v32 = vld [vmem:[#allocation4 + $0x78] sm:$0xff]  }
  0x95   :  { %v2079_v33 = vld [vmem:[#allocation4 + $0xf8] sm:$0xff]  }
  0x97   :  { %980 = vmatpush1.bf16.msra.mxu0 %v1852_v38  ;;  %1023 = vmatpush1.bf16.msra.mxu1 %v1854_v39  ;;  %v181_v38 = vlaneseq }
  0x98   :  { %981 = vmatprep.subr.bf16.mxu0 %v1861_v40  ;;  %1024 = vmatprep.subr.bf16.mxu1 %v1863_v56  ;;  %v2246_v56 = vld [vmem:[%s2274_s2] sm:$0xff] }
  0x99   :  { %v2240_v39 = vshrl.u32 %v181_v38, 7  ;;  %v2109_v38 = vld [vmem:[#allocation4 + $0x1b0] sm:$0xff]  }
  0x9b   :  { %982 = vmatpush1.bf16.msra.mxu0 %v1860_v45  ;;  %1025 = vmatpush1.bf16.msra.mxu1 %v1862_v46  ;;  %v183_v40 = vsub.s32 0, %v2240_v39  ;;  %v191_v41 = vsub.s32 2, %v2240_v39  ;;  %v187_v42 = vsub.s32 1, %v2240_v39  ;;  %v195_v43 = vsub.s32 3, %v2240_v39 }
  0x9c   :  { %983 = vmatprep.subr.bf16.mxu0 %v1869_v47  ;;  %1026 = vmatprep.subr.bf16.mxu1 %v1871_v48 }
  0x9d   :  { %v184_v44 = vrot.slane %v2246_v56, %v183_v40  ;;  %v192_v45 = vrot.slane %v2246_v56, %v191_v41  ;;  %v188_v46 = vrot.slane %v2246_v56, %v187_v42  ;;  %v196_v47 = vrot.slane %v2246_v56, %v195_v43  ;;  %v2110_v40 = vld [vmem:[#allocation4 + $0x178] sm:$0xff]  }
  0x9e   :  { %v2111_v41 = vld [vmem:[#allocation4 + $0x1f8] sm:$0xff]  }
  0x9f   :  { %984 = vmatpush1.bf16.msra.mxu0 %v1868_v53  ;;  %1027 = vmatpush1.bf16.msra.mxu1 %v1870_v54  ;;  %v2112_v42 = vld [vmem:[#allocation4 + $0x138] sm:$0xff]  }
  0xa0   :  { %985 = vmatprep.subr.bf16.mxu0 %v1877_v55  ;;  %1028 = vmatprep.subr.bf16.mxu1 %v1879_v57  ;;  %v2113_v43 = vld [vmem:[#allocation4 + $0x1b8] sm:$0xff]  }
  0xa3   :  { %986 = vmatpush1.bf16.msra.mxu0 %v1876_v62  ;;  %1029 = vmatpush1.bf16.msra.mxu1 %v1878_v63 }
  0xa4   :  { %987 = vmatprep.subr.bf16.mxu0 %v1885_v0  ;;  %1030 = vmatprep.subr.bf16.mxu1 %v1887_v1 }
  0xa7   :  { %988 = vmatpush1.bf16.msra.mxu0 %v1884_v2  ;;  %1031 = vmatpush1.bf16.msra.mxu1 %v1886_v3 }
  0xa8   :  { %1953 = vmatprep.subr.bf16.mxu0 %v2050_v4  ;;  %1975 = vmatprep.subr.bf16.mxu1 %v2051_v5 }
  0xaa   :  { %990 = vmatmul.mubr.bf16.vlgmr.msra.gmra.mrb[4].mxu0 %v2232_v7  ;;  %1033 = vmatmul.mubr.bf16.vlgmr.msra.gmra.mrb[4].mxu1 %v2232_v7  ;;  %v2065_v7 = vld [vmem:[#allocation4 + $0x98] sm:$0xff]  }
  0xab   :  { %1954 = vmatpush3.bf16.msra.mxu0 %v2052_v6  ;;  %1976 = vmatpush3.bf16.msra.mxu1 %v2053_v8 }
  0xac   :  { %1955 = vmatprep.subr.bf16.mxu0 %v2054_v9  ;;  %1977 = vmatprep.subr.bf16.mxu1 %v2055_v10 }
  0xaf   :  { %1956 = vmatpush3.bf16.msra.mxu0 %v2056_v11  ;;  %1978 = vmatpush3.bf16.msra.mxu1 %v2057_v12 }
  0xb0   :  { %1957 = vmatprep.subr.bf16.mxu0 %v2058_v13  ;;  %1979 = vmatprep.subr.bf16.mxu1 %v2059_v14  ;;  %v2084_v13 = vld [vmem:[#allocation4 + $0x100] sm:$0xff]  }
  0xb3   :  { %1958 = vmatpush3.bf16.msra.mxu0 %v2060_v15  ;;  %1980 = vmatpush3.bf16.msra.mxu1 %v2061_v16  ;;  %v2085_v15 = vld [vmem:[#allocation4 + $0x180] sm:$0xff]   ;;  %v2086_v16 = vld [vmem:[#allocation4 + $0x148] sm:$0xff]  }
  0xb4   :  { %1959 = vmatprep.subr.bf16.mxu0 %v2062_v17  ;;  %1981 = vmatprep.subr.bf16.mxu1 %v2063_v18  ;;  %v2087_v17 = vld [vmem:[#allocation4 + $0x1c8] sm:$0xff]  }
  0xb5   :  { %v2088_v18 = vld [vmem:[#allocation4 + $0x108] sm:$0xff]  }
  0xb7   :  { %1960 = vmatpush3.bf16.msra.mxu0 %v2064_v19  ;;  %1982 = vmatpush3.bf16.msra.mxu1 %v2065_v7  ;;  %v2089_v19 = vld [vmem:[#allocation4 + $0x188] sm:$0xff]   ;;  %v2090_v7 = vld [vmem:[#allocation4 + $0x150] sm:$0xff]  }
  0xb8   :  { %1961 = vmatprep.subr.bf16.mxu0 %v2066_v20  ;;  %1983 = vmatprep.subr.bf16.mxu1 %v2067_v21  ;;  %v2091_v20 = vld [vmem:[#allocation4 + $0x1d0] sm:$0xff]  }
  0xb9   :  { %v2092_v21 = vld [vmem:[#allocation4 + $0x110] sm:$0xff]  }
  0xbb   :  { %1962 = vmatpush3.bf16.msra.mxu0 %v2068_v22  ;;  %1984 = vmatpush3.bf16.msra.mxu1 %v2069_v23  ;;  %v2093_v22 = vld [vmem:[#allocation4 + $0x190] sm:$0xff]   ;;  %v2094_v23 = vld [vmem:[#allocation4 + $0x158] sm:$0xff]  }
  0xbc   :  { %1963 = vmatprep.subr.bf16.mxu0 %v2070_v24  ;;  %1985 = vmatprep.subr.bf16.mxu1 %v2071_v25  ;;  %v2095_v24 = vld [vmem:[#allocation4 + $0x1d8] sm:$0xff]  }
  0xbd   :  { %v2096_v25 = vld [vmem:[#allocation4 + $0x118] sm:$0xff]  }
  0xbf   :  { %1964 = vmatpush3.bf16.msra.mxu0 %v2072_v26  ;;  %1986 = vmatpush3.bf16.msra.mxu1 %v2073_v27  ;;  %v2097_v26 = vld [vmem:[#allocation4 + $0x198] sm:$0xff]   ;;  %v2098_v27 = vld [vmem:[#allocation4 + $0x160] sm:$0xff]  }
  0xc0   :  { %1965 = vmatprep.subr.bf16.mxu0 %v2074_v28  ;;  %1987 = vmatprep.subr.bf16.mxu1 %v2075_v29  ;;  %v2099_v28 = vld [vmem:[#allocation4 + $0x1e0] sm:$0xff]  }
  0xc1   :  { %v2100_v29 = vld [vmem:[#allocation4 + $0x120] sm:$0xff]  }
  0xc3   :  { %1966 = vmatpush3.bf16.msra.mxu0 %v2076_v30  ;;  %1988 = vmatpush3.bf16.msra.mxu1 %v2077_v31  ;;  %v2101_v30 = vld [vmem:[#allocation4 + $0x1a0] sm:$0xff]   ;;  %v2102_v31 = vld [vmem:[#allocation4 + $0x168] sm:$0xff]  }
  0xc4   :  { %1967 = vmatprep.subr.bf16.mxu0 %v2078_v32  ;;  %1989 = vmatprep.subr.bf16.mxu1 %v2079_v33  ;;  %v2103_v32 = vld [vmem:[#allocation4 + $0x1e8] sm:$0xff]  }
  0xc5   :  { %v2104_v33 = vld [vmem:[#allocation4 + $0x128] sm:$0xff]  }
  0xc7   :  { %1968 = vmatpush3.bf16.msra.mxu0 %v2080_v34  ;;  %1990 = vmatpush3.bf16.msra.mxu1 %v2081_v35  ;;  %v2105_v34 = vld [vmem:[#allocation4 + $0x1a8] sm:$0xff]   ;;  %v2106_v35 = vld [vmem:[#allocation4 + $0x170] sm:$0xff]  }
  0xc8   :  { %1997 = vmatprep.subr.bf16.mxu0 %v2082_v36  ;;  %2019 = vmatprep.subr.bf16.mxu1 %v2083_v37  ;;  %v2107_v36 = vld [vmem:[#allocation4 + $0x1f0] sm:$0xff]  }
  0xc9   :  { %v2108_v37 = vld [vmem:[#allocation4 + $0x130] sm:$0xff]  }
 0x13d   :  { %v905_v48 = vpop.f32.mrb[0].mxu0  ;;  %v948_v50 = vpop.f32.mrb[0].mxu1 }
 0x13e   :  { %v906_v49 = vadd.f32 %v905_v48, %v184_v44  ;;  %v907_v51 = vpop.f32.mrb[1].mxu0  ;;  %v949_v52 = vadd.f32 %v948_v50, %v192_v45  ;;  %v950_v54 = vpop.f32.mrb[1].mxu1 }
 0x13f   :  { %v908_v53 = vadd.f32 %v907_v51, %v188_v46  ;;  %v909_v55 = vpop.f32.mrb[2].mxu0  ;;  %v951_v58 = vadd.f32 %v950_v54, %v196_v47  ;;  %v952_v60 = vpop.f32.mrb[2].mxu1 }
 0x140   :  { %v1043_v57 = vmax.f32 %v906_v49, 0.0  ;;  %v910_v59 = vadd.f32 %v909_v55, %v184_v44  ;;  %v911_v61 = vpop.f32.mrb[3].mxu0  ;;  %v1045_v62 = vmax.f32 %v949_v52, 0.0  ;;  %v953_v63 = vadd.f32 %v952_v60, %v192_v45  ;;  %v954_v1 = vpop.f32.mrb[3].mxu1 }
 0x141   :  { %v912_v0 = vadd.f32 %v911_v61, %v188_v46  ;;  %v1046_v2 = vmax.f32 %v951_v58, 0.0  ;;  %v955_v4 = vadd.f32 %v954_v1, %v196_v47  ;;  %v1044_v5 = vmax.f32 %v908_v53, 0.0 }
 0x142   :  { %v1051_v3 = vmax.f32 %v910_v59, 0.0  ;;  %v1053_v6 = vmax.f32 %v953_v63, 0.0  ;;  %v199_v44 = vsub.s32 4, %v2240_v39  ;;  %v207_v45 = vsub.s32 6, %v2240_v39 }
 0x143   :  { %v1052_v8 = vmax.f32 %v912_v0, 0.0  ;;  %v1054_v10 = vmax.f32 %v955_v4, 0.0  ;;  %v203_v46 = vsub.s32 5, %v2240_v39  ;;  %v211_v47 = vsub.s32 7, %v2240_v39 }
 0x144   :  { %v1059_v9 = vpack.c.bf16 %v1051_v3, %v1043_v57  ;;  %v1061_v11 = vpack.c.bf16 %v1053_v6, %v1045_v62  ;;  %v200_v48 = vrot.slane %v2246_v56, %v199_v44  ;;  %v208_v49 = vrot.slane %v2246_v56, %v207_v45 }
 0x145   :  { %v1060_v12 = vpack.c.bf16 %v1052_v8, %v1044_v5  ;;  %v1062_v14 = vpack.c.bf16 %v1054_v10, %v1046_v2  ;;  %v204_v50 = vrot.slane %v2246_v56, %v203_v46  ;;  %v212_v51 = vrot.slane %v2246_v56, %v211_v47 }
 0x147   :  { %1618 = vmatprep.mubr.bf16.mxu0 %v1060_v12  ;;  %1659 = vmatprep.mubr.bf16.mxu1 %v1062_v14 }
 0x148   :  { %1619 = vmatmul.mubr.bf16.vlgmr.msra.gmra.mrb[8].mxu0 %v1059_v9  ;;  %1660 = vmatmul.mubr.bf16.vlgmr.msra.gmra.mrb[8].mxu1 %v1061_v11 }
 0x149   :  { %1998 = vmatpush3.bf16.msra.mxu0 %v2084_v13  ;;  %2020 = vmatpush3.bf16.msra.mxu1 %v2085_v15 }
 0x14a   :  { %1999 = vmatprep.subr.bf16.mxu0 %v2086_v16  ;;  %2021 = vmatprep.subr.bf16.mxu1 %v2087_v17 }
 0x14d   :  { %2000 = vmatpush3.bf16.msra.mxu0 %v2088_v18  ;;  %2022 = vmatpush3.bf16.msra.mxu1 %v2089_v19  ;;  %v1888_v18 = vld [vmem:[%s2276_s4] ss:$0 sm:$0xff] }
 0x14e   :  { %2001 = vmatprep.subr.bf16.mxu0 %v2090_v7  ;;  %2023 = vmatprep.subr.bf16.mxu1 %v2091_v20 }
 0x151   :  { %2002 = vmatpush3.bf16.msra.mxu0 %v2092_v21  ;;  %2024 = vmatpush3.bf16.msra.mxu1 %v2093_v22 }
 0x152   :  { %2003 = vmatprep.subr.bf16.mxu0 %v2094_v23  ;;  %2025 = vmatprep.subr.bf16.mxu1 %v2095_v24 }
 0x155   :  { %2004 = vmatpush3.bf16.msra.mxu0 %v2096_v25  ;;  %2026 = vmatpush3.bf16.msra.mxu1 %v2097_v26 }
 0x156   :  { %2005 = vmatprep.subr.bf16.mxu0 %v2098_v27  ;;  %2027 = vmatprep.subr.bf16.mxu1 %v2099_v28 }
 0x159   :  { %2006 = vmatpush3.bf16.msra.mxu0 %v2100_v29  ;;  %2028 = vmatpush3.bf16.msra.mxu1 %v2101_v30 }
 0x15a   :  { %2007 = vmatprep.subr.bf16.mxu0 %v2102_v31  ;;  %2029 = vmatprep.subr.bf16.mxu1 %v2103_v32 }
 0x15d   :  { %2008 = vmatpush3.bf16.msra.mxu0 %v2104_v33  ;;  %2030 = vmatpush3.bf16.msra.mxu1 %v2105_v34 }
 0x15e   :  { %2009 = vmatprep.subr.bf16.mxu0 %v2106_v35  ;;  %2031 = vmatprep.subr.bf16.mxu1 %v2107_v36 }
 0x161   :  { %2010 = vmatpush3.bf16.msra.mxu0 %v2108_v37  ;;  %2032 = vmatpush3.bf16.msra.mxu1 %v2109_v38 }
 0x162   :  { %2011 = vmatprep.subr.bf16.mxu0 %v2110_v40  ;;  %2033 = vmatprep.subr.bf16.mxu1 %v2111_v41 }
 0x165   :  { %2012 = vmatpush3.bf16.msra.mxu0 %v2112_v42  ;;  %2034 = vmatpush3.bf16.msra.mxu1 %v2113_v43 }
 0x17d   :  { %v991_v52 = vpop.f32.mrb[4].mxu0  ;;  %v1034_v54 = vpop.f32.mrb[4].mxu1 }
 0x17e   :  { %v992_v53 = vadd.f32 %v991_v52, %v200_v48  ;;  %v993_v55 = vpop.f32.mrb[5].mxu0  ;;  %v1035_v57 = vadd.f32 %v1034_v54, %v208_v49  ;;  %v1036_v59 = vpop.f32.mrb[5].mxu1 }
 0x17f   :  { %v994_v58 = vadd.f32 %v993_v55, %v204_v50  ;;  %v995_v60 = vpop.f32.mrb[6].mxu0  ;;  %v1037_v61 = vadd.f32 %v1036_v59, %v212_v51  ;;  %v1038_v63 = vpop.f32.mrb[6].mxu1 }
 0x180   :  { %v996_v62 = vadd.f32 %v995_v60, %v200_v48  ;;  %v997_v39 = vpop.f32.mrb[7].mxu0  ;;  %v1049_v0 = vmax.f32 %v1035_v57, 0.0  ;;  %v1039_v1 = vadd.f32 %v1038_v63, %v208_v49  ;;  %v1040_v3 = vpop.f32.mrb[7].mxu1  ;;  %v1047_v4 = vmax.f32 %v992_v53, 0.0 }
 0x181   :  { %v998_v2 = vadd.f32 %v997_v39, %v204_v50  ;;  %v1050_v5 = vmax.f32 %v1037_v61, 0.0  ;;  %v1041_v56 = vadd.f32 %v1040_v3, %v212_v51  ;;  %v1048_v8 = vmax.f32 %v994_v58, 0.0 }
 0x182   :  { %v1055_v6 = vmax.f32 %v996_v62, 0.0  ;;  %v1057_v9 = vmax.f32 %v1039_v1, 0.0 }
 0x183   :  { %v1056_v10 = vmax.f32 %v998_v2, 0.0  ;;  %v1058_v12 = vmax.f32 %v1041_v56, 0.0 }
 0x184   :  { %v1063_v11 = vpack.c.bf16 %v1055_v6, %v1047_v4  ;;  %v1065_v13 = vpack.c.bf16 %v1057_v9, %v1049_v0 }
 0x185   :  { %v1064_v14 = vpack.c.bf16 %v1056_v10, %v1048_v8  ;;  %v1066_v15 = vpack.c.bf16 %v1058_v12, %v1050_v5 }
 0x187   :  { %1700 = vmatprep.mubr.bf16.mxu0 %v1064_v14  ;;  %1741 = vmatprep.mubr.bf16.mxu1 %v1066_v15 }
 0x188   :  { %1701 = vmatmul.mubr.bf16.vlgmr.msra.gmra.mrb[12].mxu0 %v1063_v11  ;;  %1742 = vmatmul.mubr.bf16.vlgmr.msra.gmra.mrb[12].mxu1 %v1065_v13 }
 0x21b   :  { %v1969_v16 = vpop.f32.mrb[8].mxu0  ;;  %v1991_v17 = vpop.f32.mrb[8].mxu1 }
 0x21c   :  { %v1970_v19 = vpop.f32.mrb[9].mxu0  ;;  %v1992_v20 = vpop.f32.mrb[9].mxu1 }
 0x21d   :  { %v1971_v7 = vadd.f32 %v1970_v19, %v1969_v16  ;;  %v1972_v21 = vpop.f32.mrb[10].mxu0  ;;  %v1993_v22 = vadd.f32 %v1992_v20, %v1991_v17  ;;  %v1994_v23 = vpop.f32.mrb[10].mxu1 }
 0x21e   :  { %v1973_v24 = vpop.f32.mrb[11].mxu0  ;;  %v1995_v27 = vpop.f32.mrb[11].mxu1 }
 0x21f   :  { %v1621_v25 = vadd.f32 %v1971_v7, %v1888_v18  ;;  %v1974_v26 = vadd.f32 %v1973_v24, %v1972_v21  ;;  %v1996_v28 = vadd.f32 %v1995_v27, %v1994_v23 }
 0x221   :  { %v1662_v29 = vadd.f32 %v1993_v22, %v1621_v25  ;;  %v1624_v30 = vadd.f32 %v1974_v26, %v1888_v18 }
 0x223   :  { %v1665_v31 = vadd.f32 %v1996_v28, %v1624_v30 }
 0x25b   :  { %v2013_v32 = vpop.f32.mrb[12].mxu0  ;;  %v2035_v33 = vpop.f32.mrb[12].mxu1 }
 0x25c   :  { %v2014_v34 = vpop.f32.mrb[13].mxu0  ;;  %v2036_v36 = vpop.f32.mrb[13].mxu1 }
 0x25d   :  { %v2015_v35 = vadd.f32 %v2014_v34, %v2013_v32  ;;  %v2016_v37 = vpop.f32.mrb[14].mxu0  ;;  %v2037_v38 = vadd.f32 %v2036_v36, %v2035_v33  ;;  %v2038_v40 = vpop.f32.mrb[14].mxu1 }
 0x25e   :  { %v2017_v41 = vpop.f32.mrb[15].mxu0  ;;  %v2039_v44 = vpop.f32.mrb[15].mxu1 }
 0x25f   :  { %v1703_v42 = vadd.f32 %v2015_v35, %v1662_v29  ;;  %v2018_v43 = vadd.f32 %v2017_v41, %v2016_v37  ;;  %v2040_v45 = vadd.f32 %v2039_v44, %v2038_v40 }
 0x261   :  { %v1744_v46 = vadd.f32 %v2037_v38, %v1703_v42  ;;  %v1706_v47 = vadd.f32 %v2018_v43, %v1665_v31 }
 0x263   :  { %1750 = vst [vmem:[%s2277_s5] sm:$0xff] %v1744_v46  ;;  %v1747_v48 = vadd.f32 %v2040_v45, %v1706_v47 }
 0x265   :  { %1751 = vst [vmem:[%s2277_s5 + $0x8] sm:$0xff] %v1747_v48 }
 0x266   :  { %1756 = vsyncpa [#allocation3], 1 }
 0x267   :  { %1757 = vsyncpa [#allocation5], 1 }

</bundles_post_ra>
